<compile_context>
chip_gen: v7x
topology: tpu7x:2x2x1
jax: 0.10.0
libtpu: 0.0.40
codegen_flags: <defaults>
</compile_context>

<pallas_src>
import numpy as np
import jax
import jax.numpy as jnp
from jax.experimental import pallas as pl
from jax.experimental.pallas import tpu as pltpu


def _choose_block_frames(frames, hop, max_block_frames=16):
    """Largest divisor K of `frames` (<= max_block_frames) such that the
    per-block output slab stays 128-lane aligned (or a single block covers all
    frames).  Falls back to one block spanning all frames."""
    best = None
    for K in range(1, frames + 1):
        if frames % K:
            continue
        nblocks = frames // K
        if nblocks > 1 and (K * hop) % 128 != 0:
            continue
        if K <= max_block_frames:
            best = K
    return best if best is not None else frames


def _vmem_limit_bytes(cb_pad, K, cpd, S, input_dim, hop):
    f = 4  # f32
    io_blocks = 2 * f * (cb_pad * K * cpd + K * cb_pad * cpd + cb_pad * K * hop)
    weights = 2 * f * (K * cpd * (K + 1) * S + S * (K + 1) * S
                       + S * input_dim + cpd * input_dim)
    scratch = f * (cb_pad * S + cb_pad * hop + K * cb_pad * S)
    interm = 2 * f * (3 * cb_pad * (K + 1) * S + K * cb_pad * input_dim)
    est = 2 * (io_blocks + weights + scratch + interm)
    return int(min(64 * 2 ** 20, max(8 * 2 ** 20, est)))


def _make_ssm_kernel(K, cb_pad, cpd, S, input_dim):
    hop = input_dim // 2

    def kernel(ctrl_kl_ref, ctrl_exp_ref, wintra_ref, carrymat_ref, cw_ref,
               pdw_ref, out_ref, state_sc, oa_sc, texp_sc):
        """One batch chunk x one block of K frames.

        ctrl_kl_ref : (cb_pad, K*cpd)        rows = batch, lanes = (frame-in-block, cpd)
        ctrl_exp_ref: (K*cb_pad, cpd)        rows = (frame-in-block, batch)
        wintra_ref  : (K*cpd, (K+1)*S)       proj@B folded with A-power triangular combine
        carrymat_ref: (S, (K+1)*S)           carry propagation [A^1..A^K | A^K]
        cw_ref      : (S, input_dim)         C * window
        pdw_ref     : (cpd, input_dim)       proj@D * window
        out_ref     : (cb_pad, K*hop)        lane-dense, batch-major output slab
        state_sc    : (cb_pad, S)            recurrent state carried across blocks
        oa_sc       : (cb_pad, hop)          previous frame's 2nd half (overlap-add carry)
        texp_sc     : (K*cb_pad, S)          (frame, batch)-major pre-add states
        """
        nb = pl.program_id(1)

        @pl.when(nb == 0)
        def _init():
            state_sc[...] = jnp.zeros_like(state_sc)
            oa_sc[...] = jnp.zeros_like(oa_sc)

        # --- blocked scan: advance K frames with one small carry matmul -----
        #   intra[:, k*S:(k+1)*S] = sum_{j<k} b_j @ A^(k-j)      (k = 0..K-1)
        #   intra[:, K*S:]        = sum_{j<K} b_j @ A^(K-1-j)    (next-carry part)
        # with b_j = ctrl_j @ proj @ B folded into W_intra offline.
        intra = jnp.dot(ctrl_kl_ref[...], wintra_ref[...],
                        preferred_element_type=jnp.float32)       # (cb, (K+1)S)
        carry = jnp.dot(state_sc[...], carrymat_ref[...],
                        preferred_element_type=jnp.float32)       # (cb, (K+1)S)
        comb = intra + carry
        state_sc[...] = comb[:, K * S:]                           # carry to next block

        # Re-layout the K pre-add states to (frame, batch) rows so the output
        # matmul is one batched MXU call (static, sublane-aligned copies).
        for k in range(K):
            texp_sc[k * cb_pad:(k + 1) * cb_pad, :] = comb[:, k * S:(k + 1) * S]

        # --- output side: C path + D path (window folded into Cw / PDw) -----
        # D path is recomputed here, after the scan, so nothing wide stays live
        # across the recurrence.
        frames_out = (
            jnp.dot(texp_sc[...], cw_ref[...], preferred_element_type=jnp.float32)
            + jnp.dot(ctrl_exp_ref[...], pdw_ref[...],
                      preferred_element_type=jnp.float32)
        )                                                          # (K*cb, input_dim)

        # --- 50% overlap-add, carried across blocks via oa_sc ----------------
        prev = oa_sc[...]                                          # (cb, hop)
        for k in range(K):
            frame_k = frames_out[k * cb_pad:(k + 1) * cb_pad, :]
            out_ref[:, k * hop:(k + 1) * hop] = frame_k[:, :hop] + prev
            prev = frame_k[:, hop:]
        oa_sc[...] = prev

    return kernel


def ssm_forward(control, proj, state_matrix, input_matrix, output_matrix,
                direct_matrix, *, windowed=True, batch_chunks=1,
                max_block_frames=16):
    """control: (batch, control_plane_dim, frames) -> (batch, 1, frames*hop).

    batch_chunks shards the batch over grid axis 0 ("parallel").  Only use >1
    when batch // batch_chunks >= 8; otherwise sublane padding dominates and a
    single chunk is faster (review guidance).
    """
    f32 = jnp.float32
    batch, cpd, frames = control.shape
    input_dim = proj.shape[1]
    S = state_matrix.shape[0]
    hop = input_dim // 2

    assert batch % batch_chunks == 0
    cb = batch // batch_chunks
    cb_pad = ((cb + 7) // 8) * 8                    # pad rows to full sublanes
    K = _choose_block_frames(frames, hop, max_block_frames)
    nblocks = frames // K

    # ---- offline weight preprocessing (proj / window / A-power folds) -------
    A = state_matrix.astype(f32)
    PB = proj.astype(f32) @ input_matrix.astype(f32)               # (cpd, S)
    if windowed:
        # TODO(synk): assumed Hann window (periodic=False); overlap_add()
        # source was not provided.
        n = jnp.arange(input_dim, dtype=f32)
        win = 0.5 * (1.0 - jnp.cos(2.0 * jnp.pi * n / (input_dim - 1)))
    else:
        win = jnp.ones((input_dim,), f32)
    Cw = output_matrix.astype(f32) * win[None, :]                  # (S, input_dim)
    PDw = (proj.astype(f32) @ direct_matrix.astype(f32)) * win[None, :]

    apow = [jnp.eye(S, dtype=f32)]
    for _ in range(K):
        apow.append(apow[-1] @ A)                                  # apow[p] = A^p

    # W_intra: (K*cpd, (K+1)*S); block (j,k) = PB @ A^(k-j) for j < k <= K-1
    # (pre-add-state columns) and block (j,K) = PB @ A^(K-1-j) (carry column).
    wintra = jnp.zeros((K * cpd, (K + 1) * S), f32)
    for j in range(K):
        for k in range(j + 1, K):
            wintra = wintra.at[j * cpd:(j + 1) * cpd,
                               k * S:(k + 1) * S].set(PB @ apow[k - j])
        wintra = wintra.at[j * cpd:(j + 1) * cpd, K * S:].set(PB @ apow[K - 1 - j])

    # Carry matrix: t_{m+k} gets s@A^(k+1); the next-block carry gets s@A^K.
    carrymat = jnp.zeros((S, (K + 1) * S), f32)
    for k in range(K):
        carrymat = carrymat.at[:, k * S:(k + 1) * S].set(apow[k + 1])
    carrymat = carrymat.at[:, K * S:].set(apow[K])

    # ---- control layout plumbing (wrapper-side, cheap) -----------------------
    ctrl = jnp.transpose(control.astype(f32), (0, 2, 1))           # (batch, frames, cpd)
    ctrl = ctrl.reshape(batch_chunks, cb, frames, cpd)
    if cb_pad != cb:
        ctrl = jnp.pad(ctrl, ((0, 0), (0, cb_pad - cb), (0, 0), (0, 0)))
    ctrl = ctrl.reshape(batch_chunks, cb_pad, nblocks, K, cpd)
    # scan-side layout: rows = batch, lanes = (frame-in-block, cpd)
    ctrl_kl = jnp.transpose(ctrl, (0, 2, 1, 3, 4)).reshape(
        batch_chunks, nblocks, cb_pad, K * cpd)
    # frame-expanded layout for C/D-path matmuls: rows = (frame-in-block, batch)
    ctrl_exp = jnp.transpose(ctrl, (0, 2, 3, 1, 4)).reshape(
        batch_chunks, nblocks, K * cb_pad, cpd)

    kernel = _make_ssm_kernel(K, cb_pad, cpd, S, input_dim)

    out = pl.pallas_call(
        kernel,
        out_shape=jax.ShapeDtypeStruct((batch_chunks, cb_pad, frames * hop), f32),
        grid_spec=pltpu.PrefetchScalarGridSpec(
            num_scalar_prefetch=0,
            grid=(batch_chunks, nblocks),
            in_specs=[
                pl.BlockSpec((None, None, cb_pad, K * cpd),
                             lambda c, nb: (c, nb, 0, 0)),
                pl.BlockSpec((None, None, K * cb_pad, cpd),
                             lambda c, nb: (c, nb, 0, 0)),
                pl.BlockSpec((K * cpd, (K + 1) * S), lambda c, nb: (0, 0)),
                pl.BlockSpec((S, (K + 1) * S), lambda c, nb: (0, 0)),
                pl.BlockSpec((S, input_dim), lambda c, nb: (0, 0)),
                pl.BlockSpec((cpd, input_dim), lambda c, nb: (0, 0)),
            ],
            out_specs=pl.BlockSpec((None, cb_pad, K * hop),
                                   lambda c, nb: (c, 0, nb)),
            scratch_shapes=[
                pltpu.VMEM((cb_pad, S), f32),        # recurrent state carry
                pltpu.VMEM((cb_pad, hop), f32),      # overlap-add carry
                pltpu.VMEM((K * cb_pad, S), f32),    # (frame, batch)-major states
            ],
        ),
        compiler_params=pltpu.CompilerParams(
            dimension_semantics=("parallel", "arbitrary"),
            vmem_limit_bytes=_vmem_limit_bytes(cb_pad, K, cpd, S, input_dim, hop),
        ),
    )(ctrl_kl, ctrl_exp, wintra, carrymat, Cw, PDw)

    # Output is already batch-major and lane-dense; just drop padding rows.
    out = out[:, :cb, :].reshape(batch, frames * hop)
    return out[:, None, :]


def ssm_reference(control, proj, A, B, C, D, *, windowed=True):
    """Plain-JAX reference mirroring the PyTorch forward (for validation)."""
    batch, cpd, frames = control.shape
    input_dim = proj.shape[1]
    S = A.shape[0]
    hop = input_dim // 2
    ctrl = jnp.transpose(control, (0, 2, 1)).astype(jnp.float32)   # (batch, frames, cpd)
    projd = ctrl @ proj                                            # (batch, frames, input_dim)

    state = jnp.zeros((batch, S), jnp.float32)
    outs = []
    for i in range(frames):
        inp = projd[:, i, :]
        state = state @ A
        b = inp @ B
        c = state @ C
        d = inp @ D
        state = state + b
        outs.append(c + d)
    framesx = jnp.stack(outs, axis=1)                              # (batch, frames, input_dim)

    if windowed:
        n = jnp.arange(input_dim, dtype=jnp.float32)
        win = 0.5 * (1.0 - jnp.cos(2.0 * jnp.pi * n / (input_dim - 1)))
        framesx = framesx * win[None, None, :]

    first = framesx[:, :, :hop].reshape(batch, -1)
    second = framesx[:, :, hop:].reshape(batch, -1)
    total = frames * hop
    out = first[:, :total] + jnp.concatenate(
        [jnp.zeros((batch, hop), jnp.float32), second[:, :total - hop]], axis=-1)
    return out[:, None, :]


if __name__ == "__main__":
    control_plane_dim = 8
    input_dim = 32
    state_matrix_dim = 16

    key = jax.random.PRNGKey(0)
    k0, k1, k2, k3, k4, k5, k6 = jax.random.split(key, 7)

    # Parameters: uniform(-0.01, 0.01), matching the torch init ranges.
    proj = jax.random.uniform(k0, (control_plane_dim, input_dim),
                              jnp.float32, -0.01, 0.01)
    state_matrix = jax.random.uniform(k1, (state_matrix_dim, state_matrix_dim),
                                      jnp.float32, -0.01, 0.01)
    input_matrix = jax.random.uniform(k2, (input_dim, state_matrix_dim),
                                      jnp.float32, -0.01, 0.01)
    output_matrix = jax.random.uniform(k3, (state_matrix_dim, input_dim),
                                       jnp.float32, -0.01, 0.01)
    direct_matrix = jax.random.uniform(k4, (input_dim, input_dim),
                                       jnp.float32, -0.01, 0.01)

    # Config 1: batch=2, frames=8 -> single block (K=8), batch padded 2 -> 8.
    control = jax.random.normal(k5, (2, control_plane_dim, 8), jnp.float32)
    ref = jax.block_until_ready(
        ssm_reference(control, proj, state_matrix, input_matrix,
                      output_matrix, direct_matrix, windowed=True))
    out = jax.block_until_ready(
        ssm_forward(control, proj, state_matrix, input_matrix,
                    output_matrix, direct_matrix, windowed=True))
    assert out.shape == (2, 1, 8 * (input_dim // 2))
    np.testing.assert_allclose(np.asarray(out), np.asarray(ref),
                               rtol=1e-4, atol=1e-5)

    # Config 2: batch=3, frames=16 with K=8 -> 2 serial blocks; exercises the
    # cross-block state and overlap-add carries on the "arbitrary" grid axis.
    control2 = jax.random.normal(k6, (3, control_plane_dim, 16), jnp.float32)
    ref2 = jax.block_until_ready(
        ssm_reference(control2, proj, state_matrix, input_matrix,
                      output_matrix, direct_matrix, windowed=True))
    out2 = jax.block_until_ready(
        ssm_forward(control2, proj, state_matrix, input_matrix,
                    output_matrix, direct_matrix, windowed=True,
                    max_block_frames=8))
    np.testing.assert_allclose(np.asarray(out2), np.asarray(ref2),
                               rtol=1e-4, atol=1e-5)

    print("KERNEL_OK")
</pallas_src>

<mosaic_0001>
module attributes {stable_mosaic.version = 11 : i64} {
  func.func @kernel(%arg0: i32, %arg1: i32, %arg2: memref<1x1x8x64xf32, #tpu.memory_space<vmem>>, %arg3: memref<1x1x64x8xf32, #tpu.memory_space<vmem>>, %arg4: memref<64x144xf32, #tpu.memory_space<vmem>>, %arg5: memref<16x144xf32, #tpu.memory_space<vmem>>, %arg6: memref<16x32xf32, #tpu.memory_space<vmem>>, %arg7: memref<8x32xf32, #tpu.memory_space<vmem>>, %arg8: memref<1x8x128xf32, #tpu.memory_space<vmem>>, %arg9: memref<8x16xf32, #tpu.memory_space<vmem>>, %arg10: memref<8x16xf32, #tpu.memory_space<vmem>>, %arg11: memref<64x16xf32, #tpu.memory_space<vmem>>) attributes {dimension_semantics = [#tpu.dimension_semantics<parallel>, #tpu.dimension_semantics<arbitrary>], iteration_bounds = array<i64: 1, 1>, scalar_prefetch = 0 : i64, scratch_operands = 3 : i64, tpu.core_type = #tpu.core_type<tc>, window_params = [{transform_indices = @transform_0, window_bounds = array<i64: 1, 1, 8, 64>}, {transform_indices = @transform_1, window_bounds = array<i64: 1, 1, 64, 8>}, {pipeline_mode = #tpu.pipeline_mode<synchronous>, transform_indices = @transform_2, window_bounds = array<i64: 64, 144>}, {pipeline_mode = #tpu.pipeline_mode<synchronous>, transform_indices = @transform_3, window_bounds = array<i64: 16, 144>}, {pipeline_mode = #tpu.pipeline_mode<synchronous>, transform_indices = @transform_4, window_bounds = array<i64: 16, 32>}, {pipeline_mode = #tpu.pipeline_mode<synchronous>, transform_indices = @transform_5, window_bounds = array<i64: 8, 32>}, {transform_indices = @transform_6, window_bounds = array<i64: 1, 8, 128>}]} {
    %c0_i32 = arith.constant 0 : i32
    %0 = arith.cmpi eq, %arg1, %c0_i32 : i32
    %1 = arith.extui %0 : i1 to i32
    %c0_i32_0 = arith.constant 0 : i32
    %2 = arith.cmpi ne, %1, %c0_i32_0 : i32
    scf.if %2 {
      %cst_58 = arith.constant 0.000000e+00 : f32
      %95 = vector.broadcast %cst_58 : f32 to vector<8x16xf32>
      %c0_59 = arith.constant 0 : index
      %c0_60 = arith.constant 0 : index
      %96 = vector.load %arg9[%c0_59, %c0_60] : memref<8x16xf32, #tpu.memory_space<vmem>>, vector<8x16xf32>
      tpu.vector_store %arg9[%c0_59, %c0_60], %95 {strides = array<i32>} : memref<8x16xf32, #tpu.memory_space<vmem>>, vector<8x16xf32>,
      %cst_61 = arith.constant 0.000000e+00 : f32
      %97 = vector.broadcast %cst_61 : f32 to vector<8x16xf32>
      %c0_62 = arith.constant 0 : index
      %c0_63 = arith.constant 0 : index
      %98 = vector.load %arg10[%c0_62, %c0_63] : memref<8x16xf32, #tpu.memory_space<vmem>>, vector<8x16xf32>
      tpu.vector_store %arg10[%c0_62, %c0_63], %97 {strides = array<i32>} : memref<8x16xf32, #tpu.memory_space<vmem>>, vector<8x16xf32>,
    } else {
    }
    %c0 = arith.constant 0 : index
    %c0_1 = arith.constant 0 : index
    %c0_2 = arith.constant 0 : index
    %c0_3 = arith.constant 0 : index
    %3 = vector.load %arg2[%c0, %c0_1, %c0_2, %c0_3] : memref<1x1x8x64xf32, #tpu.memory_space<vmem>>, vector<1x1x8x64xf32>
    %4 = vector.shape_cast %3 : vector<1x1x8x64xf32> to vector<8x64xf32>
    %c0_4 = arith.constant 0 : index
    %c0_5 = arith.constant 0 : index
    %5 = vector.load %arg4[%c0_4, %c0_5] : memref<64x144xf32, #tpu.memory_space<vmem>>, vector<64x144xf32>
    %cst = arith.constant dense<0.000000e+00> : vector<8x144xf32>
    %6 = tpu.matmul %4, %5, %cst {dimension_numbers = #tpu.dot_dimension_numbers<[1], [0], [0], [1], [0, 0, 1, 1], [], []>} : vector<8x64xf32>, vector<64x144xf32>, vector<8x144xf32> -> vector<8x144xf32>
    %c0_6 = arith.constant 0 : index
    %c0_7 = arith.constant 0 : index
    %7 = vector.load %arg9[%c0_6, %c0_7] : memref<8x16xf32, #tpu.memory_space<vmem>>, vector<8x16xf32>
    %c0_8 = arith.constant 0 : index
    %c0_9 = arith.constant 0 : index
    %8 = vector.load %arg5[%c0_8, %c0_9] : memref<16x144xf32, #tpu.memory_space<vmem>>, vector<16x144xf32>
    %cst_10 = arith.constant dense<0.000000e+00> : vector<8x144xf32>
    %9 = tpu.matmul %7, %8, %cst_10 {dimension_numbers = #tpu.dot_dimension_numbers<[1], [0], [0], [1], [0, 0, 1, 1], [], []>} : vector<8x16xf32>, vector<16x144xf32>, vector<8x144xf32> -> vector<8x144xf32>
    %10 = arith.addf %6, %9 : vector<8x144xf32>
    %11 = vector.extract_strided_slice %10 {offsets = [0, 128], sizes = [8, 16], strides = [1, 1]} : vector<8x144xf32> to vector<8x16xf32>
    %c0_11 = arith.constant 0 : index
    %c0_12 = arith.constant 0 : index
    %12 = vector.load %arg9[%c0_11, %c0_12] : memref<8x16xf32, #tpu.memory_space<vmem>>, vector<8x16xf32>
    tpu.vector_store %arg9[%c0_11, %c0_12], %11 {strides = array<i32>} : memref<8x16xf32, #tpu.memory_space<vmem>>, vector<8x16xf32>,
    %13 = vector.extract_strided_slice %10 {offsets = [0, 0], sizes = [8, 16], strides = [1, 1]} : vector<8x144xf32> to vector<8x16xf32>
    %c0_13 = arith.constant 0 : index
    %c0_14 = arith.constant 0 : index
    %14 = vector.load %arg11[%c0_13, %c0_14] : memref<64x16xf32, #tpu.memory_space<vmem>>, vector<8x16xf32>
    tpu.vector_store %arg11[%c0_13, %c0_14], %13 {strides = array<i32>} : memref<64x16xf32, #tpu.memory_space<vmem>>, vector<8x16xf32>,
    %15 = vector.extract_strided_slice %10 {offsets = [0, 16], sizes = [8, 16], strides = [1, 1]} : vector<8x144xf32> to vector<8x16xf32>
    %c8 = arith.constant 8 : index
    %c0_15 = arith.constant 0 : index
    %16 = vector.load %arg11[%c8, %c0_15] : memref<64x16xf32, #tpu.memory_space<vmem>>, vector<8x16xf32>
    tpu.vector_store %arg11[%c8, %c0_15], %15 {strides = array<i32>} : memref<64x16xf32, #tpu.memory_space<vmem>>, vector<8x16xf32>,
    %17 = vector.extract_strided_slice %10 {offsets = [0, 32], sizes = [8, 16], strides = [1, 1]} : vector<8x144xf32> to vector<8x16xf32>
    %c16 = arith.constant 16 : index
    %c0_16 = arith.constant 0 : index
    %18 = vector.load %arg11[%c16, %c0_16] : memref<64x16xf32, #tpu.memory_space<vmem>>, vector<8x16xf32>
    tpu.vector_store %arg11[%c16, %c0_16], %17 {strides = array<i32>} : memref<64x16xf32, #tpu.memory_space<vmem>>, vector<8x16xf32>,
    %19 = vector.extract_strided_slice %10 {offsets = [0, 48], sizes = [8, 16], strides = [1, 1]} : vector<8x144xf32> to vector<8x16xf32>
    %c24 = arith.constant 24 : index
    %c0_17 = arith.constant 0 : index
    %20 = vector.load %arg11[%c24, %c0_17] : memref<64x16xf32, #tpu.memory_space<vmem>>, vector<8x16xf32>
    tpu.vector_store %arg11[%c24, %c0_17], %19 {strides = array<i32>} : memref<64x16xf32, #tpu.memory_space<vmem>>, vector<8x16xf32>,
    %21 = vector.extract_strided_slice %10 {offsets = [0, 64], sizes = [8, 16], strides = [1, 1]} : vector<8x144xf32> to vector<8x16xf32>
    %c32 = arith.constant 32 : index
    %c0_18 = arith.constant 0 : index
    %22 = vector.load %arg11[%c32, %c0_18] : memref<64x16xf32, #tpu.memory_space<vmem>>, vector<8x16xf32>
    tpu.vector_store %arg11[%c32, %c0_18], %21 {strides = array<i32>} : memref<64x16xf32, #tpu.memory_space<vmem>>, vector<8x16xf32>,
    %23 = vector.extract_strided_slice %10 {offsets = [0, 80], sizes = [8, 16], strides = [1, 1]} : vector<8x144xf32> to vector<8x16xf32>
    %c40 = arith.constant 40 : index
    %c0_19 = arith.constant 0 : index
    %24 = vector.load %arg11[%c40, %c0_19] : memref<64x16xf32, #tpu.memory_space<vmem>>, vector<8x16xf32>
    tpu.vector_store %arg11[%c40, %c0_19], %23 {strides = array<i32>} : memref<64x16xf32, #tpu.memory_space<vmem>>, vector<8x16xf32>,
    %25 = vector.extract_strided_slice %10 {offsets = [0, 96], sizes = [8, 16], strides = [1, 1]} : vector<8x144xf32> to vector<8x16xf32>
    %c48 = arith.constant 48 : index
    %c0_20 = arith.constant 0 : index
    %26 = vector.load %arg11[%c48, %c0_20] : memref<64x16xf32, #tpu.memory_space<vmem>>, vector<8x16xf32>
    tpu.vector_store %arg11[%c48, %c0_20], %25 {strides = array<i32>} : memref<64x16xf32, #tpu.memory_space<vmem>>, vector<8x16xf32>,
    %27 = vector.extract_strided_slice %10 {offsets = [0, 112], sizes = [8, 16], strides = [1, 1]} : vector<8x144xf32> to vector<8x16xf32>
    %c56 = arith.constant 56 : index
    %c0_21 = arith.constant 0 : index
    %28 = vector.load %arg11[%c56, %c0_21] : memref<64x16xf32, #tpu.memory_space<vmem>>, vector<8x16xf32>
    tpu.vector_store %arg11[%c56, %c0_21], %27 {strides = array<i32>} : memref<64x16xf32, #tpu.memory_space<vmem>>, vector<8x16xf32>,
    %c0_22 = arith.constant 0 : index
    %c0_23 = arith.constant 0 : index
    %29 = vector.load %arg11[%c0_22, %c0_23] : memref<64x16xf32, #tpu.memory_space<vmem>>, vector<64x16xf32>
    %c0_24 = arith.constant 0 : index
    %c0_25 = arith.constant 0 : index
    %30 = vector.load %arg6[%c0_24, %c0_25] : memref<16x32xf32, #tpu.memory_space<vmem>>, vector<16x32xf32>
    %cst_26 = arith.constant dense<0.000000e+00> : vector<64x32xf32>
    %31 = tpu.matmul %29, %30, %cst_26 {dimension_numbers = #tpu.dot_dimension_numbers<[1], [0], [0], [1], [0, 0, 1, 1], [], []>} : vector<64x16xf32>, vector<16x32xf32>, vector<64x32xf32> -> vector<64x32xf32>
    %c0_27 = arith.constant 0 : index
    %c0_28 = arith.constant 0 : index
    %c0_29 = arith.constant 0 : index
    %c0_30 = arith.constant 0 : index
    %32 = vector.load %arg3[%c0_27, %c0_28, %c0_29, %c0_30] : memref<1x1x64x8xf32, #tpu.memory_space<vmem>>, vector<1x1x64x8xf32>
    %33 = vector.shape_cast %32 : vector<1x1x64x8xf32> to vector<64x8xf32>
    %c0_31 = arith.constant 0 : index
    %c0_32 = arith.constant 0 : index
    %34 = vector.load %arg7[%c0_31, %c0_32] : memref<8x32xf32, #tpu.memory_space<vmem>>, vector<8x32xf32>
    %cst_33 = arith.constant dense<0.000000e+00> : vector<64x32xf32>
    %35 = tpu.matmul %33, %34, %cst_33 {dimension_numbers = #tpu.dot_dimension_numbers<[1], [0], [0], [1], [0, 0, 1, 1], [], []>} : vector<64x8xf32>, vector<8x32xf32>, vector<64x32xf32> -> vector<64x32xf32>
    %36 = arith.addf %31, %35 : vector<64x32xf32>
    %c0_34 = arith.constant 0 : index
    %c0_35 = arith.constant 0 : index
    %37 = vector.load %arg10[%c0_34, %c0_35] : memref<8x16xf32, #tpu.memory_space<vmem>>, vector<8x16xf32>
    %38 = vector.extract_strided_slice %36 {offsets = [0, 0], sizes = [8, 32], strides = [1, 1]} : vector<64x32xf32> to vector<8x32xf32>
    %39 = vector.extract_strided_slice %38 {offsets = [0, 0], sizes = [8, 16], strides = [1, 1]} : vector<8x32xf32> to vector<8x16xf32>
    %40 = arith.addf %39, %37 : vector<8x16xf32>
    %c0_36 = arith.constant 0 : index
    %c0_37 = arith.constant 0 : index
    %c0_38 = arith.constant 0 : index
    %41 = vector.load %arg8[%c0_36, %c0_37, %c0_38] : memref<1x8x128xf32, #tpu.memory_space<vmem>>, vector<1x8x16xf32>
    %42 = vector.shape_cast %41 : vector<1x8x16xf32> to vector<8x16xf32>
    %43 = vector.shape_cast %40 : vector<8x16xf32> to vector<1x8x16xf32>
    tpu.vector_store %arg8[%c0_36, %c0_37, %c0_38], %43 {strides = array<i32>} : memref<1x8x128xf32, #tpu.memory_space<vmem>>, vector<1x8x16xf32>,
    %44 = vector.extract_strided_slice %38 {offsets = [0, 16], sizes = [8, 16], strides = [1, 1]} : vector<8x32xf32> to vector<8x16xf32>
    %45 = vector.extract_strided_slice %36 {offsets = [8, 0], sizes = [8, 32], strides = [1, 1]} : vector<64x32xf32> to vector<8x32xf32>
    %46 = vector.extract_strided_slice %45 {offsets = [0, 0], sizes = [8, 16], strides = [1, 1]} : vector<8x32xf32> to vector<8x16xf32>
    %47 = arith.addf %46, %44 : vector<8x16xf32>
    %c0_39 = arith.constant 0 : index
    %c0_40 = arith.constant 0 : index
    %c16_41 = arith.constant 16 : index
    %48 = vector.load %arg8[%c0_39, %c0_40, %c16_41] : memref<1x8x128xf32, #tpu.memory_space<vmem>>, vector<1x8x16xf32>
    %49 = vector.shape_cast %48 : vector<1x8x16xf32> to vector<8x16xf32>
    %50 = vector.shape_cast %47 : vector<8x16xf32> to vector<1x8x16xf32>
    tpu.vector_store %arg8[%c0_39, %c0_40, %c16_41], %50 {strides = array<i32>} : memref<1x8x128xf32, #tpu.memory_space<vmem>>, vector<1x8x16xf32>,
    %51 = vector.extract_strided_slice %45 {offsets = [0, 16], sizes = [8, 16], strides = [1, 1]} : vector<8x32xf32> to vector<8x16xf32>
    %52 = vector.extract_strided_slice %36 {offsets = [16, 0], sizes = [8, 32], strides = [1, 1]} : vector<64x32xf32> to vector<8x32xf32>
    %53 = vector.extract_strided_slice %52 {offsets = [0, 0], sizes = [8, 16], strides = [1, 1]} : vector<8x32xf32> to vector<8x16xf32>
    %54 = arith.addf %53, %51 : vector<8x16xf32>
    %c0_42 = arith.constant 0 : index
    %c0_43 = arith.constant 0 : index
    %c32_44 = arith.constant 32 : index
    %55 = vector.load %arg8[%c0_42, %c0_43, %c32_44] : memref<1x8x128xf32, #tpu.memory_space<vmem>>, vector<1x8x16xf32>
    %56 = vector.shape_cast %55 : vector<1x8x16xf32> to vector<8x16xf32>
    %57 = vector.shape_cast %54 : vector<8x16xf32> to vector<1x8x16xf32>
    tpu.vector_store %arg8[%c0_42, %c0_43, %c32_44], %57 {strides = array<i32>} : memref<1x8x128xf32, #tpu.memory_space<vmem>>, vector<1x8x16xf32>,
    %58 = vector.extract_strided_slice %52 {offsets = [0, 16], sizes = [8, 16], strides = [1, 1]} : vector<8x32xf32> to vector<8x16xf32>
    %59 = vector.extract_strided_slice %36 {offsets = [24, 0], sizes = [8, 32], strides = [1, 1]} : vector<64x32xf32> to vector<8x32xf32>
    %60 = vector.extract_strided_slice %59 {offsets = [0, 0], sizes = [8, 16], strides = [1, 1]} : vector<8x32xf32> to vector<8x16xf32>
    %61 = arith.addf %60, %58 : vector<8x16xf32>
    %c0_45 = arith.constant 0 : index
    %c0_46 = arith.constant 0 : index
    %c48_47 = arith.constant 48 : index
    %62 = vector.load %arg8[%c0_45, %c0_46, %c48_47] : memref<1x8x128xf32, #tpu.memory_space<vmem>>, vector<1x8x16xf32>
    %63 = vector.shape_cast %62 : vector<1x8x16xf32> to vector<8x16xf32>
    %64 = vector.shape_cast %61 : vector<8x16xf32> to vector<1x8x16xf32>
    tpu.vector_store %arg8[%c0_45, %c0_46, %c48_47], %64 {strides = array<i32>} : memref<1x8x128xf32, #tpu.memory_space<vmem>>, vector<1x8x16xf32>,
    %65 = vector.extract_strided_slice %59 {offsets = [0, 16], sizes = [8, 16], strides = [1, 1]} : vector<8x32xf32> to vector<8x16xf32>
    %66 = vector.extract_strided_slice %36 {offsets = [32, 0], sizes = [8, 32], strides = [1, 1]} : vector<64x32xf32> to vector<8x32xf32>
    %67 = vector.extract_strided_slice %66 {offsets = [0, 0], sizes = [8, 16], strides = [1, 1]} : vector<8x32xf32> to vector<8x16xf32>
    %68 = arith.addf %67, %65 : vector<8x16xf32>
    %c0_48 = arith.constant 0 : index
    %c0_49 = arith.constant 0 : index
    %c64 = arith.constant 64 : index
    %69 = vector.load %arg8[%c0_48, %c0_49, %c64] : memref<1x8x128xf32, #tpu.memory_space<vmem>>, vector<1x8x16xf32>
    %70 = vector.shape_cast %69 : vector<1x8x16xf32> to vector<8x16xf32>
    %71 = vector.shape_cast %68 : vector<8x16xf32> to vector<1x8x16xf32>
    tpu.vector_store %arg8[%c0_48, %c0_49, %c64], %71 {strides = array<i32>} : memref<1x8x128xf32, #tpu.memory_space<vmem>>, vector<1x8x16xf32>,
    %72 = vector.extract_strided_slice %66 {offsets = [0, 16], sizes = [8, 16], strides = [1, 1]} : vector<8x32xf32> to vector<8x16xf32>
    %73 = vector.extract_strided_slice %36 {offsets = [40, 0], sizes = [8, 32], strides = [1, 1]} : vector<64x32xf32> to vector<8x32xf32>
    %74 = vector.extract_strided_slice %73 {offsets = [0, 0], sizes = [8, 16], strides = [1, 1]} : vector<8x32xf32> to vector<8x16xf32>
    %75 = arith.addf %74, %72 : vector<8x16xf32>
    %c0_50 = arith.constant 0 : index
    %c0_51 = arith.constant 0 : index
    %c80 = arith.constant 80 : index
    %76 = vector.load %arg8[%c0_50, %c0_51, %c80] : memref<1x8x128xf32, #tpu.memory_space<vmem>>, vector<1x8x16xf32>
    %77 = vector.shape_cast %76 : vector<1x8x16xf32> to vector<8x16xf32>
    %78 = vector.shape_cast %75 : vector<8x16xf32> to vector<1x8x16xf32>
    tpu.vector_store %arg8[%c0_50, %c0_51, %c80], %78 {strides = array<i32>} : memref<1x8x128xf32, #tpu.memory_space<vmem>>, vector<1x8x16xf32>,
    %79 = vector.extract_strided_slice %73 {offsets = [0, 16], sizes = [8, 16], strides = [1, 1]} : vector<8x32xf32> to vector<8x16xf32>
    %80 = vector.extract_strided_slice %36 {offsets = [48, 0], sizes = [8, 32], strides = [1, 1]} : vector<64x32xf32> to vector<8x32xf32>
    %81 = vector.extract_strided_slice %80 {offsets = [0, 0], sizes = [8, 16], strides = [1, 1]} : vector<8x32xf32> to vector<8x16xf32>
    %82 = arith.addf %81, %79 : vector<8x16xf32>
    %c0_52 = arith.constant 0 : index
    %c0_53 = arith.constant 0 : index
    %c96 = arith.constant 96 : index
    %83 = vector.load %arg8[%c0_52, %c0_53, %c96] : memref<1x8x128xf32, #tpu.memory_space<vmem>>, vector<1x8x16xf32>
    %84 = vector.shape_cast %83 : vector<1x8x16xf32> to vector<8x16xf32>
    %85 = vector.shape_cast %82 : vector<8x16xf32> to vector<1x8x16xf32>
    tpu.vector_store %arg8[%c0_52, %c0_53, %c96], %85 {strides = array<i32>} : memref<1x8x128xf32, #tpu.memory_space<vmem>>, vector<1x8x16xf32>,
    %86 = vector.extract_strided_slice %80 {offsets = [0, 16], sizes = [8, 16], strides = [1, 1]} : vector<8x32xf32> to vector<8x16xf32>
    %87 = vector.extract_strided_slice %36 {offsets = [56, 0], sizes = [8, 32], strides = [1, 1]} : vector<64x32xf32> to vector<8x32xf32>
    %88 = vector.extract_strided_slice %87 {offsets = [0, 0], sizes = [8, 16], strides = [1, 1]} : vector<8x32xf32> to vector<8x16xf32>
    %89 = arith.addf %88, %86 : vector<8x16xf32>
    %c0_54 = arith.constant 0 : index
    %c0_55 = arith.constant 0 : index
    %c112 = arith.constant 112 : index
    %90 = vector.load %arg8[%c0_54, %c0_55, %c112] : memref<1x8x128xf32, #tpu.memory_space<vmem>>, vector<1x8x16xf32>
    %91 = vector.shape_cast %90 : vector<1x8x16xf32> to vector<8x16xf32>
    %92 = vector.shape_cast %89 : vector<8x16xf32> to vector<1x8x16xf32>
    tpu.vector_store %arg8[%c0_54, %c0_55, %c112], %92 {strides = array<i32>} : memref<1x8x128xf32, #tpu.memory_space<vmem>>, vector<1x8x16xf32>,
    %93 = vector.extract_strided_slice %87 {offsets = [0, 16], sizes = [8, 16], strides = [1, 1]} : vector<8x32xf32> to vector<8x16xf32>
    %c0_56 = arith.constant 0 : index
    %c0_57 = arith.constant 0 : index
    %94 = vector.load %arg10[%c0_56, %c0_57] : memref<8x16xf32, #tpu.memory_space<vmem>>, vector<8x16xf32>
    tpu.vector_store %arg10[%c0_56, %c0_57], %93 {strides = array<i32>} : memref<8x16xf32, #tpu.memory_space<vmem>>, vector<8x16xf32>,
    return
  }
  func.func @transform_0(%arg0: i32, %arg1: i32) -> (i32, i32, i32, i32) {
    %c0_i32 = arith.constant 0 : i32
    %c0_i32_0 = arith.constant 0 : i32
    %c0_i32_1 = arith.constant 0 : i32
    return %arg0, %arg1, %c0_i32, %c0_i32_0 : i32, i32, i32, i32
  }
  func.func @transform_1(%arg0: i32, %arg1: i32) -> (i32, i32, i32, i32) {
    %c0_i32 = arith.constant 0 : i32
    %c0_i32_0 = arith.constant 0 : i32
    %c0_i32_1 = arith.constant 0 : i32
    return %arg0, %arg1, %c0_i32, %c0_i32_0 : i32, i32, i32, i32
  }
  func.func @transform_2(%arg0: i32, %arg1: i32) -> (i32, i32) {
    %c0_i32 = arith.constant 0 : i32
    %c0_i32_0 = arith.constant 0 : i32
    %c0_i32_1 = arith.constant 0 : i32
    return %c0_i32, %c0_i32_0 : i32, i32
  }
  func.func @transform_3(%arg0: i32, %arg1: i32) -> (i32, i32) {
    %c0_i32 = arith.constant 0 : i32
    %c0_i32_0 = arith.constant 0 : i32
    %c0_i32_1 = arith.constant 0 : i32
    return %c0_i32, %c0_i32_0 : i32, i32
  }
  func.func @transform_4(%arg0: i32, %arg1: i32) -> (i32, i32) {
    %c0_i32 = arith.constant 0 : i32
    %c0_i32_0 = arith.constant 0 : i32
    %c0_i32_1 = arith.constant 0 : i32
    return %c0_i32, %c0_i32_0 : i32, i32
  }
  func.func @transform_5(%arg0: i32, %arg1: i32) -> (i32, i32) {
    %c0_i32 = arith.constant 0 : i32
    %c0_i32_0 = arith.constant 0 : i32
    %c0_i32_1 = arith.constant 0 : i32
    return %c0_i32, %c0_i32_0 : i32, i32
  }
  func.func @transform_6(%arg0: i32, %arg1: i32) -> (i32, i32, i32) {
    %c0_i32 = arith.constant 0 : i32
    %c0_i32_0 = arith.constant 0 : i32
    return %arg0, %c0_i32, %arg1 : i32, i32, i32
  }
}

</mosaic_0001>

<bundles_post_ra>
// kernel: tpu_custom_call.1
= control target key start
LH: loop header
LB: loop body
LE: loop exit
PB: predicated region body
PF: predicated region fallthrough
CT: control target
= control target key end

     0   :  { %11 = vsyncpa [#allocation6], 0  ;;  %s959_s0 = inlined_call_operand.vmem [shape: f32[1,1,8,64], index: 0, kind: input, shape index: {}]   ;;  %s960_s1 = inlined_call_operand.vmem [shape: f32[1,1,64,8], index: 1, kind: input, shape index: {}]   ;;  %s961_s2 = inlined_call_operand.hbm [shape: f32[64,144], index: 2, kind: input, shape index: {}]   ;;  %s962_s3 = inlined_call_operand.vmem [shape: f32[16,144], index: 3, kind: input, shape index: {}]   ;;  %s963_s4 = inlined_call_operand.vmem [shape: f32[16,32], index: 4, kind: input, shape index: {}]   ;;  %s964_s5 = inlined_call_operand.vmem [shape: f32[8,32], index: 5, kind: input, shape index: {}]   ;;  %s965_s6 = inlined_call_operand.hbm [shape: f32[1,8,128], index: 6, kind: output, shape index: {}]  }
   0x1   :  { %12 = vsyncpa [#allocation7], 0  ;;  %s788_s21 = smov [#allocation5]   ;;  %s740_s25 = scalar_lea.hbm %s961_s2, 2048 }
   0x2   :  { %s22_s22 = sshll.u32 %s788_s21, 4  ;;  %p741_p0 = scmp.ne.s32.totalorder %s961_s2, %s740_s25  ;;  %s23_s22 = int_to_ptr.vmem [resolvable:$true] %s22_s22 }
   0x3   :  { %p744_p1 = scmp.lt.u32.totalorder %s740_s25, %s961_s2 }
   0x5   :  { %p746_p2 = pnand %p744_p1, %p741_p0 }
   0x7   :  { %749 = shalt.err (!%p746_p2)
}
   0x8   :  { %s750_s30 = scalar_lea.vmem %s23_s22, 2048  ;;  %p755_p4 = scmp.lt.s32.totalorder %s23_s22, %s23_s22 }
   0x9   :  { %p751_p3 = scmp.ne.s32.totalorder %s23_s22, %s750_s30  ;;  %p756_p5 = scmp.lt.s32.totalorder %s750_s30, %s750_s30 }
   0xb   :  { %p757_p6 = por %p756_p5, %p755_p4 }
   0xd   :  { %p758_p7 = pnand %p757_p6, %p751_p3 }
   0xf   :  { %761 = shalt.err (!%p758_p7)
}
  0x10   :  { %s789_s7 = smov 256   ;;  %s790_s8 = smov 16  }
  0x11   :  { %28 = dma.hbm_to_vmem [thread:$0]  %s961_s2, 2048, %s23_s22, [#allocation6], %s789_s7, %s789_s7, %s790_s8  }
  0x12   :  { %784 = dma.done.wait [#allocation6], 2048  }
  0x13   :  { %785 = vsyncadd [#allocation6], 4294965248  ;;  %vm42_vm0 = vcmask 130048   ;;  %v791_v0 = vmov 0.0   ;;  %v64_v1 = vld [vmem:[%s962_s3 + $0x8] sm:$0xff]  ;;  %v66_v2 = vld [vmem:[%s962_s3 + $0x18] sm:$0xff] }
  0x14   :  { %43 = vst.msk [vmem:[#allocation2] sm:$0xff] %vm42_vm0, %v791_v0  ;;  %44 = vst.msk [vmem:[#allocation3] sm:$0xff] %vm42_vm0, %v791_v0  ;;  %135 = vmatprep.mubr.f32.mxu0 %v791_v0  ;;  %v63_v3 = vld [vmem:[%s962_s3] sm:$0xff]  ;;  %v693_v4 = vpack.c.bf16 %v66_v2, %v64_v1  ;;  %v65_v5 = vld [vmem:[%s962_s3 + $0x10] sm:$0xff]  ;;  %vm267_vm1 = vcmask 64512   ;;  %vm142_vm2 = vcmask 523264  }
  0x15   :  { %v47_v6 = vld [vmem:[#allocation5 + $0x8] sm:$0xff]  ;;  %v49_v7 = vld [vmem:[#allocation5 + $0x18] sm:$0xff]  ;;  %v695_v8 = vpack.c.bf16 %v65_v5, %v63_v3  ;;  %v46_v10 = vld [vmem:[#allocation5] sm:$0xff]  ;;  %s792_s16 = smov 80   ;;  %s794_s2 = smov 64   ;;  %vm538_vm3 = vcmask 261248  }
  0x16   :  { %v697_v9 = vpack.c.bf16 %v49_v7, %v47_v6  ;;  %v48_v11 = vld [vmem:[#allocation5 + $0x10] sm:$0xff]  ;;  %694 = vmatprep.subr.bf16.mxu0 %v693_v4  ;;  %v51_v12 = vld [vmem:[#allocation5 + $0x28] sm:$0xff]  ;;  %v53_v13 = vld [vmem:[#allocation5 + $0x38] sm:$0xff]  ;;  %s796_s17 = smov 32   ;;  %s797_s3 = smov 48   ;;  %vm549_vm4 = vcmask 392448  }
  0x17   :  { %696 = vmatpush1.bf16.msra.mxu0 %v695_v8  ;;  %v699_v15 = vpack.c.bf16 %v48_v11, %v46_v10  ;;  %v701_v16 = vpack.c.bf16 %v53_v13, %v51_v12  ;;  %v50_v17 = vld [vmem:[#allocation5 + $0x20] sm:$0xff]  ;;  %v52_v18 = vld [vmem:[#allocation5 + $0x30] sm:$0xff]  ;;  %v55_v19 = vld [vmem:[#allocation5 + $0x48] sm:$0xff]  ;;  %vm560_vm5 = vcmask 523648   ;;  %vm571_vm6 = vcmask 654848  }
  0x18   :  { %698 = vmatprep.subr.bf16.mxu0 %v697_v9  ;;  %v57_v20 = vld [vmem:[#allocation5 + $0x58] sm:$0xff]  ;;  %v266_v21 = vld [vmem:[%s964_s5] sm:$0xff]  ;;  %v260_v22 = vld [vmem:[%s960_s1 + $0x10] sm:$0xff]  ;;  %v703_v23 = vpack.c.bf16 %v52_v18, %v50_v17  ;;  %vm582_vm7 = vcmask 786048   ;;  %vm593_vm8 = vcmask 917248   ;;  %vm604_vm9 = vcmask 1048448  }
  0x19   :  { %v705_v24 = vpack.c.bf16 %v57_v20, %v55_v19  ;;  %v54_v25 = vld [vmem:[#allocation5 + $0x40] sm:$0xff]  ;;  %v56_v26 = vld [vmem:[#allocation5 + $0x50] sm:$0xff]  ;;  %717 = vmatprep.subr.mxu1 %v266_v21  ;;  %v59_v27 = vld [vmem:[#allocation5 + $0x68] sm:$0xff]  ;;  %668 = vmatprep.mubr.msk.f32.mxu1 %vm267_vm1, %v260_v22 }
  0x1a   :  { %v61_v28 = vld [vmem:[#allocation5 + $0x78] sm:$0xff]  ;;  %718 = vmatpush3.msra.mxu1 %v266_v21  ;;  %v707_v29 = vpack.c.bf16 %v56_v26, %v54_v25  ;;  %v58_v31 = vld [vmem:[#allocation5 + $0x60] sm:$0xff]  ;;  %v60_v32 = vld [vmem:[#allocation5 + $0x70] sm:$0xff] }
  0x1b   :  { %v62_v14 = vld [vmem:[#allocation2] sm:$0xff]  ;;  %v709_v30 = vpack.c.bf16 %v61_v28, %v59_v27  ;;  %v711_v33 = vpack.c.bf16 %v60_v32, %v58_v31  ;;  %v261_v35 = vld [vmem:[%s960_s1 + $0x18] sm:$0xff]  ;;  %v263_v37 = vld [vmem:[%s960_s1 + $0x28] sm:$0xff] }
  0x1c   :  { %626 = vmatmul.mubr.msk.f32.vlgmr.msra.gmra.mrb[0].mxu0 %vm42_vm0, %v62_v14  ;;  %v45_v34 = vld [vmem:[%s959_s0] sm:$0xff]  ;;  %669 = vmatmul.mubr.msk.f32.vlgmr.msra.gmra.mrb[0].mxu1 %vm267_vm1, %v261_v35  ;;  %v264_v38 = vld [vmem:[%s960_s1 + $0x30] sm:$0xff]  ;;  %v265_v39 = vld [vmem:[%s960_s1 + $0x38] sm:$0xff] }
  0x1d   :  { %700 = vmatpush1.bf16.msra.mxu0 %v699_v15  ;;  %210 = vmatprep.mubr.f32.mxu0 %v791_v0  ;;  %v262_v36 = vld [vmem:[%s960_s1 + $0x20] sm:$0xff]  ;;  %v257_v41 = vld [vmem:[%s963_s4 + $0x8] sm:$0xff] }
  0x1e   :  { %702 = vmatprep.subr.bf16.mxu0 %v701_v16  ;;  %671 = vmatprep.mubr.msk.f32.mxu1 %vm267_vm1, %v262_v36  ;;  %v256_v40 = vld [vmem:[%s963_s4] sm:$0xff]  ;;  %v259_v44 = vld [vmem:[%s960_s1 + $0x8] sm:$0xff]  ;;  %s793_s4 = smov 112  }
  0x1f   :  { %v713_v42 = vpack.c.bf16 %v257_v41, %v256_v40  ;;  %v258_v43 = vld [vmem:[%s960_s1] sm:$0xff]  ;;  %s795_s1 = smov 96   ;;  %v526_v3 = vld [vmem:[#allocation3] sm:$0xff] }
  0x20   :  { %672 = vmatmul.mubr.msk.f32.gmra.mrb[2].mxu1 %vm267_vm1, %v263_v37 }
  0x21   :  { %704 = vmatpush1.bf16.msra.mxu0 %v703_v23  ;;  %674 = vmatprep.mubr.msk.f32.mxu1 %vm267_vm1, %v264_v38 }
  0x22   :  { %706 = vmatprep.subr.bf16.mxu0 %v705_v24  ;;  %714 = vmatprep.subr.bf16.mxu1 %v713_v42 }
  0x23   :  { %716 = vmatpush3.bf16.msra.mxu1 %v713_v42 }
  0x24   :  { %675 = vmatmul.mubr.msk.f32.gmra.mrb[4].mxu1 %vm267_vm1, %v265_v39 }
  0x25   :  { %708 = vmatpush1.bf16.msra.mxu0 %v707_v29 }
  0x26   :  { %710 = vmatprep.subr.bf16.mxu0 %v709_v30 }
  0x29   :  { %712 = vmatpush1.bf16.msra.mxu0 %v711_v33 }
  0x2a   :  { %663 = vmatprep.subr.mxu0 %v266_v21 }
  0x2c   :  { %627 = vmatmul.mubr.msk.f32.vlgmr.msra.gmra.mrb[0].mxu0 %vm142_vm2, %v45_v34 }
  0x2d   :  { %664 = vmatpush3.msra.mxu0 %v266_v21  ;;  %665 = vmatprep.mubr.msk.f32.mxu0 %vm267_vm1, %v258_v43 }
  0x30   :  { %666 = vmatmul.mubr.msk.f32.vlgmr.msra.gmra.mrb[2].mxu0 %vm267_vm1, %v259_v44 }
  0xff   :  { %v212_v45 = vpop.f32.mrb[0].mxu0 }
 0x100   :  { %218 = vst.msk [vmem:[#allocation4] sm:$0xff] %vm42_vm0, %v212_v45  ;;  %228 = vrot.lane.b32.xlu1 %v212_v45, %s792_s16  ;;  %220 = vrot.lane.b32.xlu0 %v212_v45, %s793_s4  ;;  %v214_v46 = vpop.f32.mrb[1].mxu0 }
 0x101   :  { %217 = vst.msk [vmem:[#allocation2] sm:$0xff] %vm42_vm0, %v214_v46 }
 0x103   :  { %v667_v62 = vpop.f32.mrb[2].mxu0 }
 0x104   :  { %232 = vrot.lane.b32.xlu1 %v212_v45, %s794_s2  ;;  %224 = vrot.lane.b32.xlu0 %v212_v45, %s795_s1  ;;  %v358_v63 = vpop.f32.mrb[3].mxu0 }
 0x107   :  { %v248_v47 = vld [vmem:[#allocation4] sm:$0xff] }
 0x108   :  { %240 = vrot.lane.b32.xlu1 %v212_v45, %s796_s17  ;;  %236 = vrot.lane.b32.xlu0 %v212_v45, %s797_s3 }
 0x109   :  { %681 = vmatprep.mubr.msk.f32.mxu1 %vm42_vm0, %v248_v47 }
 0x10c   :  { %244 = vrot.lane.b32.xlu0 %v212_v45, %s790_s8 }
 0x172   :  { %v229_v48 = vpop.permute.xlu1 %228  ;;  %v221_v49 = vpop.permute.xlu0 %220 }
 0x173   :  { %231 = vst.msk [vmem:[#allocation4 + $0x18] sm:$0xff] %vm42_vm0, %v229_v48  ;;  %223 = vst.msk [vmem:[#allocation4 + $0x8] sm:$0xff] %vm42_vm0, %v221_v49 }
 0x176   :  { %v233_v50 = vpop.permute.xlu1 %232  ;;  %v225_v51 = vpop.permute.xlu0 %224 }
 0x177   :  { %235 = vst.msk [vmem:[#allocation4 + $0x20] sm:$0xff] %vm42_vm0, %v233_v50  ;;  %227 = vst.msk [vmem:[#allocation4 + $0x10] sm:$0xff] %vm42_vm0, %v225_v51 }
 0x17a   :  { %v241_v52 = vpop.permute.xlu1 %240  ;;  %v237_v53 = vpop.permute.xlu0 %236  ;;  %v249_v54 = vld [vmem:[#allocation4 + $0x8] sm:$0xff]  ;;  %v251_v57 = vld [vmem:[#allocation4 + $0x18] sm:$0xff] }
 0x17b   :  { %243 = vst.msk [vmem:[#allocation4 + $0x30] sm:$0xff] %vm42_vm0, %v241_v52  ;;  %239 = vst.msk [vmem:[#allocation4 + $0x28] sm:$0xff] %vm42_vm0, %v237_v53  ;;  %682 = vmatmul.mubr.msk.f32.vlgmr.msra.gmra.mrb[6].mxu1 %vm42_vm0, %v249_v54 }
 0x17e   :  { %v245_v55 = vpop.permute.xlu0 %244  ;;  %v250_v56 = vld [vmem:[#allocation4 + $0x10] sm:$0xff]  ;;  %v252_v58 = vld [vmem:[#allocation4 + $0x20] sm:$0xff] }
 0x17f   :  { %247 = vst.msk [vmem:[#allocation4 + $0x38] sm:$0xff] %vm42_vm0, %v245_v55  ;;  %684 = vmatprep.mubr.msk.f32.mxu1 %vm42_vm0, %v250_v56 }
 0x180   :  { %685 = vmatmul.mubr.msk.f32.gmra.mrb[0].mxu1 %vm42_vm0, %v251_v57 }
 0x181   :  { %687 = vmatprep.mubr.msk.f32.mxu1 %vm42_vm0, %v252_v58 }
 0x182   :  { %v253_v59 = vld [vmem:[#allocation4 + $0x28] sm:$0xff]  ;;  %v254_v60 = vld [vmem:[#allocation4 + $0x30] sm:$0xff] }
 0x184   :  { %688 = vmatmul.mubr.msk.f32.gmra.mrb[2].mxu1 %vm42_vm0, %v253_v59 }
 0x185   :  { %690 = vmatprep.mubr.msk.f32.mxu1 %vm42_vm0, %v254_v60 }
 0x186   :  { %v255_v61 = vld [vmem:[#allocation4 + $0x38] sm:$0xff] }
 0x188   :  { %691 = vmatmul.mubr.msk.f32.gmra.mrb[4].mxu1 %vm42_vm0, %v255_v61 }
 0x24e   :  { %v683_v0 = vpop.f32.mrb[6].mxu1 }
 0x24f   :  { %v493_v1 = vadd.f32 %v683_v0, %v667_v62  ;;  %v487_v2 = vpop.f32.mrb[7].mxu1 }
 0x250   :  { %v488_v4 = vadd.f32 %v487_v2, %v358_v63 }
 0x251   :  { %541 = vrot.lane.b32.xlu0 %v493_v1, %s793_s4 }
 0x252   :  { %v527_v5 = vadd.f32 %v526_v3, %v488_v4  ;;  %530 = vrot.lane.b32.xlu1 %v488_v4, %s793_s4 }
 0x253   :  { %v686_v6 = vpop.f32.mrb[0].mxu1 }
 0x254   :  { %528 = vst.msk [vmem:[#allocation8] sm:$0xff] %vm42_vm0, %v527_v5  ;;  %v497_v7 = vpop.f32.mrb[1].mxu1 }
 0x255   :  { %563 = vrot.lane.b32.xlu0 %v686_v6, %s793_s4 }
 0x256   :  { %552 = vrot.lane.b32.xlu1 %v497_v7, %s793_s4 }
 0x257   :  { %v689_v8 = vpop.f32.mrb[2].mxu1 }
 0x258   :  { %v507_v9 = vpop.f32.mrb[3].mxu1 }
 0x259   :  { %585 = vrot.lane.b32.xlu0 %v689_v8, %s793_s4 }
 0x25a   :  { %574 = vrot.lane.b32.xlu1 %v507_v9, %s793_s4 }
 0x25b   :  { %v692_v10 = vpop.f32.mrb[4].mxu1 }
 0x25c   :  { %v517_v11 = vpop.f32.mrb[5].mxu1 }
 0x25e   :  { %596 = vrot.lane.b32.xlu1 %v517_v11, %s793_s4 }
 0x2c3   :  { %v542_v12 = vpop.permute.xlu0 %541 }
 0x2c4   :  { %v544_v13 = vadd.f32 %v542_v12, %v497_v7  ;;  %v531_v14 = vpop.permute.xlu1 %530 }
 0x2c5   :  { %v533_v15 = vadd.f32 %v531_v14, %v493_v1 }
 0x2c6   :  { %546 = vrot.lane.b32.xlu1 %v544_v13, %s796_s17 }
 0x2c7   :  { %v564_v16 = vpop.permute.xlu0 %563  ;;  %535 = vrot.lane.b32.xlu0 %v533_v15, %s790_s8  ;;  %s798_s8 = smov [#allocation8]  }
 0x2c8   :  { %v566_v17 = vadd.f32 %v564_v16, %v507_v9  ;;  %v553_v18 = vpop.permute.xlu1 %552  ;;  %s617_s18 = sshll.u32 %s798_s8, 4  ;;  %s618_s18 = int_to_ptr.vmem [resolvable:$true] %s617_s18 }
 0x2c9   :  { %v555_v19 = vadd.f32 %v686_v6, %v553_v18  ;;  %s762_s19 = scalar_lea.vmem %s618_s18, 128  ;;  %p767_p9 = scmp.lt.s32.totalorder %s618_s18, %s618_s18 }
 0x2ca   :  { %568 = vrot.lane.b32.xlu1 %v566_v17, %s794_s2  ;;  %p763_p8 = scmp.ne.s32.totalorder %s618_s18, %s762_s19  ;;  %p768_p10 = scmp.lt.s32.totalorder %s762_s19, %s762_s19 }
 0x2cb   :  { %v586_v20 = vpop.permute.xlu0 %585  ;;  %557 = vrot.lane.b32.xlu0 %v555_v19, %s797_s3 }
 0x2cc   :  { %v588_v21 = vadd.f32 %v586_v20, %v517_v11  ;;  %v575_v22 = vpop.permute.xlu1 %574  ;;  %p769_p11 = por %p768_p10, %p767_p9 }
 0x2cd   :  { %v577_v23 = vadd.f32 %v689_v8, %v575_v22 }
 0x2ce   :  { %590 = vrot.lane.b32.xlu1 %v588_v21, %s795_s1  ;;  %p770_p12 = pnand %p769_p11, %p763_p8 }
 0x2cf   :  { %579 = vrot.lane.b32.xlu0 %v577_v23, %s792_s16 }
 0x2d0   :  { %v597_v24 = vpop.permute.xlu1 %596 }
 0x2d1   :  { %v599_v25 = vadd.f32 %v692_v10, %v597_v24 }
 0x2d2   :  { %607 = vrot.lane.b32.xlu1 %v692_v10, %s793_s4 }
 0x2d3   :  { %601 = vrot.lane.b32.xlu0 %v599_v25, %s793_s4 }
 0x338   :  { %v547_v26 = vpop.permute.xlu1 %546 }
 0x339   :  { %v536_v27 = vpop.permute.xlu0 %535 }
 0x33a   :  { %539 = vst.msk [vmem:[#allocation8] sm:$0xff] %vm538_vm3, %v536_v27 }
 0x33b   :  { %550 = vst.msk [vmem:[#allocation8] sm:$0xff] %vm549_vm4, %v547_v26 }
 0x33c   :  { %v569_v28 = vpop.permute.xlu1 %568 }
 0x33d   :  { %v558_v29 = vpop.permute.xlu0 %557 }
 0x33e   :  { %561 = vst.msk [vmem:[#allocation8] sm:$0xff] %vm560_vm5, %v558_v29 }
 0x33f   :  { %572 = vst.msk [vmem:[#allocation8] sm:$0xff] %vm571_vm6, %v569_v28 }
 0x340   :  { %v591_v30 = vpop.permute.xlu1 %590 }
 0x341   :  { %v580_v31 = vpop.permute.xlu0 %579 }
 0x342   :  { %583 = vst.msk [vmem:[#allocation8] sm:$0xff] %vm582_vm7, %v580_v31 }
 0x343   :  { %594 = vst.msk [vmem:[#allocation8] sm:$0xff] %vm593_vm8, %v591_v30 }
 0x344   :  { %v608_v32 = vpop.permute.xlu1 %607 }
 0x345   :  { %610 = vst.msk [vmem:[#allocation3] sm:$0xff] %vm42_vm0, %v608_v32  ;;  %v602_v33 = vpop.permute.xlu0 %601 }
 0x346   :  { %605 = vst.msk [vmem:[#allocation8] sm:$0xff] %vm604_vm9, %v602_v33 }
 0x347   :  { %773 = shalt.err (!%p770_p12)
}
 0x348   :  { %s774_s21 = scalar_lea.hbm %s965_s6, 128 }
 0x349   :  { %p775_p13 = scmp.ne.s32.totalorder %s965_s6, %s774_s21  ;;  %p778_p0 = scmp.lt.u32.totalorder %s774_s21, %s965_s6 }
 0x34b   :  { %p780_p1 = pnand %p778_p0, %p775_p13 }
 0x34d   :  { %783 = shalt.err (!%p780_p1)
}
 0x34e   :  { %620 = dma.vmem_to_hbm [thread:$0]  %s618_s18, 128, %s965_s6, [#allocation7]  }
 0x34f   :  { %786 = dma.done.wait [#allocation7], 128  }
 0x350   :  { %787 = vsyncadd [#allocation7], 4294967168 }
 0x351   :  { %624 = vsyncpa [#allocation6], 1 }
 0x352   :  { %625 = vsyncpa [#allocation7], 1 }

</bundles_post_ra>
